<compile_context>
chip_gen: v5e
topology: v5e:2x2
jax: 0.10.0
libtpu: 0.0.40
codegen_flags: <defaults>
</compile_context>

<pallas_src>
import jax
import jax.numpy as jnp
from jax.experimental import pallas as pl
from jax.experimental.pallas import tpu as pltpu


def _decoder_kernel(x_ref, w1_ref, b1_ref, w2_ref, b2_ref, mu_ref):
    # linear1 + relu.  Dot operands in bf16 (MXU-native on v6e/v7x), f32 accumulate.
    x = x_ref[...].astype(jnp.bfloat16)
    w1 = w1_ref[...].astype(jnp.bfloat16)
    h = jnp.dot(x, w1, preferred_element_type=jnp.float32) + b1_ref[...]
    h = jnp.maximum(h, 0.0)
    # linear2 + tanh  ->  mu (loc of the Normal)
    w2 = w2_ref[...].astype(jnp.bfloat16)
    mu = jnp.dot(h.astype(jnp.bfloat16), w2, preferred_element_type=jnp.float32) + b2_ref[...]
    mu_ref[...] = jnp.tanh(mu).astype(mu_ref.dtype)


def _round_up(n, m):
    return ((n + m - 1) // m) * m


def decoder_forward(x, params, *, tb=None):
    """x: (B, D_in) float32.  Returns (mu, scale), each (B, D_out) float32.

    Equivalent to torch.distributions.Normal(loc=mu, scale=ones_like(mu)) —
    we return the distribution's (loc, scale) parameters.
    """
    w1, b1, w2, b2 = params
    B, D_in = x.shape
    H = w1.shape[1]
    D_out = w2.shape[1]

    # Batch-tile choice:
    #   * small B  -> one block covering the whole batch (no pipeline steps);
    #   * large B  -> 512-row tiles so nb >= 2 and the parallel axis shards
    #     across both v7x TensorCores.  No padding / slicing: Pallas masks the
    #     partial trailing block at the array edge.
    if tb is None:
        tb = _round_up(B, 8) if B <= 512 else 512
    else:
        tb = _round_up(tb, 8)
    nb = pl.cdiv(B, tb)

    mu = pl.pallas_call(
        _decoder_kernel,
        out_shape=jax.ShapeDtypeStruct((B, D_out), jnp.float32),
        grid=(nb,),
        in_specs=[
            pl.BlockSpec((tb, D_in), lambda i: (i, 0)),    # x: tiled over batch
            pl.BlockSpec((D_in, H), lambda i: (0, 0)),     # weights/biases: constant
            pl.BlockSpec((1, H),    lambda i: (0, 0)),     #   index_map => VMEM-resident
            pl.BlockSpec((H, D_out), lambda i: (0, 0)),
            pl.BlockSpec((1, D_out), lambda i: (0, 0)),
        ],
        out_specs=pl.BlockSpec((tb, D_out), lambda i: (i, 0)),
        compiler_params=pltpu.CompilerParams(
            dimension_semantics=("parallel",),             # megacore / v7x 2-TC sharding
        ),
    )(x, w1, b1, w2, b2)

    # torch.ones_like(mu): trivial constant; built outside the kernel so we
    # don't pay a second in-kernel output DMA for a constant.
    scale = jnp.ones_like(mu)
    return mu, scale


def init_params(key, D_in, H, D_out):
    """Deterministic init mimicking torch.nn.Linear default (uniform +/- 1/sqrt(fan_in)).
    Weights stored as (in, out); biases as (1, out) for TPU-friendly broadcasting."""
    ks = jax.random.split(key, 4)

    def linear(kw, kb, fan_in, fan_out):
        bound = 1.0 / jnp.sqrt(float(fan_in))
        w = jax.random.uniform(kw, (fan_in, fan_out), jnp.float32, -bound, bound)
        b = jax.random.uniform(kb, (1, fan_out), jnp.float32, -bound, bound)
        return w, b

    w1, b1 = linear(ks[0], ks[1], D_in, H)
    w2, b2 = linear(ks[2], ks[3], H, D_out)
    return (w1, b1, w2, b2)


def decoder_ref(x, params):
    """Pure-JAX reference of the PyTorch forward, for correctness checking."""
    w1, b1, w2, b2 = params
    h = jax.nn.relu(x @ w1 + b1)
    mu = jnp.tanh(h @ w2 + b2)
    return mu, jnp.ones_like(mu)


if __name__ == "__main__":
    D_in = 8      # latent size feeding the decoder
    H = 32        # hidden width
    D_out = 128   # flattened output width (lane-dense: multiple of 128)
    B = 16        # small batch -> single block, no grid steps

    key = jax.random.PRNGKey(0)
    kx, kp = jax.random.split(key)
    x = jax.random.normal(kx, (B, D_in), jnp.float32)
    params = init_params(kp, D_in, H, D_out)

    mu, scale = jax.jit(decoder_forward)(x, params)
    jax.block_until_ready((mu, scale))

    # sanity check against pure-JAX f32 reference (bf16 MXU operands -> loose tol)
    mu_r, scale_r = decoder_ref(x, params)
    assert mu.shape == (B, D_out) and scale.shape == (B, D_out)
    assert jnp.allclose(mu, mu_r, atol=3e-2, rtol=3e-2)
    assert jnp.allclose(scale, scale_r)
    assert bool(jnp.all(scale == 1.0))

    # TODO(synk): torch.distributions.Normal object itself has no Pallas
    # equivalent; we return its (loc, scale) parameters instead.
    print("KERNEL_OK")
</pallas_src>

<mosaic_0001>
module attributes {stable_mosaic.version = 11 : i64} {
  func.func @_decoder_kernel(%arg0: i32, %arg1: memref<16x8xf32, #tpu.memory_space<vmem>>, %arg2: memref<8x32xf32, #tpu.memory_space<vmem>>, %arg3: memref<1x32xf32, #tpu.memory_space<vmem>>, %arg4: memref<32x128xf32, #tpu.memory_space<vmem>>, %arg5: memref<1x128xf32, #tpu.memory_space<vmem>>, %arg6: memref<16x128xf32, #tpu.memory_space<vmem>>) attributes {dimension_semantics = [#tpu.dimension_semantics<parallel>], iteration_bounds = array<i64: 1>, scalar_prefetch = 0 : i64, scratch_operands = 0 : i64, tpu.core_type = #tpu.core_type<tc>, window_params = [{transform_indices = @transform_0, window_bounds = array<i64: 16, 8>}, {pipeline_mode = #tpu.pipeline_mode<synchronous>, transform_indices = @transform_1, window_bounds = array<i64: 8, 32>}, {pipeline_mode = #tpu.pipeline_mode<synchronous>, transform_indices = @transform_2, window_bounds = array<i64: 1, 32>}, {pipeline_mode = #tpu.pipeline_mode<synchronous>, transform_indices = @transform_3, window_bounds = array<i64: 32, 128>}, {pipeline_mode = #tpu.pipeline_mode<synchronous>, transform_indices = @transform_4, window_bounds = array<i64: 1, 128>}, {transform_indices = @transform_5, window_bounds = array<i64: 16, 128>}]} {
    %c0 = arith.constant 0 : index
    %c0_0 = arith.constant 0 : index
    %0 = vector.load %arg1[%c0, %c0_0] : memref<16x8xf32, #tpu.memory_space<vmem>>, vector<16x8xf32>
    %1 = arith.truncf %0 : vector<16x8xf32> to vector<16x8xbf16>
    %c0_1 = arith.constant 0 : index
    %c0_2 = arith.constant 0 : index
    %2 = vector.load %arg2[%c0_1, %c0_2] : memref<8x32xf32, #tpu.memory_space<vmem>>, vector<8x32xf32>
    %3 = arith.truncf %2 : vector<8x32xf32> to vector<8x32xbf16>
    %cst = arith.constant dense<0.000000e+00> : vector<16x32xf32>
    %4 = tpu.matmul %1, %3, %cst {dimension_numbers = #tpu.dot_dimension_numbers<[1], [0], [0], [1], [0, 0, 1, 1], [], []>} : vector<16x8xbf16>, vector<8x32xbf16>, vector<16x32xf32> -> vector<16x32xf32>
    %c0_3 = arith.constant 0 : index
    %c0_4 = arith.constant 0 : index
    %5 = vector.load %arg3[%c0_3, %c0_4] : memref<1x32xf32, #tpu.memory_space<vmem>>, vector<1x32xf32>
    %6 = vector.broadcast %5 : vector<1x32xf32> to vector<16x32xf32>
    %7 = arith.addf %4, %6 : vector<16x32xf32>
    %cst_5 = arith.constant 0.000000e+00 : f32
    %8 = vector.broadcast %cst_5 : f32 to vector<16x32xf32>
    %9 = arith.maximumf %7, %8 : vector<16x32xf32>
    %c0_6 = arith.constant 0 : index
    %c0_7 = arith.constant 0 : index
    %10 = vector.load %arg4[%c0_6, %c0_7] : memref<32x128xf32, #tpu.memory_space<vmem>>, vector<32x128xf32>
    %11 = arith.truncf %10 : vector<32x128xf32> to vector<32x128xbf16>
    %12 = arith.truncf %9 : vector<16x32xf32> to vector<16x32xbf16>
    %cst_8 = arith.constant dense<0.000000e+00> : vector<16x128xf32>
    %13 = tpu.matmul %12, %11, %cst_8 {dimension_numbers = #tpu.dot_dimension_numbers<[1], [0], [0], [1], [0, 0, 1, 1], [], []>} : vector<16x32xbf16>, vector<32x128xbf16>, vector<16x128xf32> -> vector<16x128xf32>
    %c0_9 = arith.constant 0 : index
    %c0_10 = arith.constant 0 : index
    %14 = vector.load %arg5[%c0_9, %c0_10] : memref<1x128xf32, #tpu.memory_space<vmem>>, vector<1x128xf32>
    %15 = vector.broadcast %14 : vector<1x128xf32> to vector<16x128xf32>
    %16 = arith.addf %13, %15 : vector<16x128xf32>
    %17 = math.tanh %16 : vector<16x128xf32>
    %c0_11 = arith.constant 0 : index
    %c0_12 = arith.constant 0 : index
    %18 = vector.load %arg6[%c0_11, %c0_12] : memref<16x128xf32, #tpu.memory_space<vmem>>, vector<16x128xf32>
    tpu.vector_store %arg6[%c0_11, %c0_12], %17 {strides = array<i32>} : memref<16x128xf32, #tpu.memory_space<vmem>>, vector<16x128xf32>,
    return
  }
  func.func @transform_0(%arg0: i32) -> (i32, i32) {
    %c0_i32 = arith.constant 0 : i32
    %c0_i32_0 = arith.constant 0 : i32
    return %arg0, %c0_i32 : i32, i32
  }
  func.func @transform_1(%arg0: i32) -> (i32, i32) {
    %c0_i32 = arith.constant 0 : i32
    %c0_i32_0 = arith.constant 0 : i32
    %c0_i32_1 = arith.constant 0 : i32
    return %c0_i32, %c0_i32_0 : i32, i32
  }
  func.func @transform_2(%arg0: i32) -> (i32, i32) {
    %c0_i32 = arith.constant 0 : i32
    %c0_i32_0 = arith.constant 0 : i32
    %c0_i32_1 = arith.constant 0 : i32
    return %c0_i32, %c0_i32_0 : i32, i32
  }
  func.func @transform_3(%arg0: i32) -> (i32, i32) {
    %c0_i32 = arith.constant 0 : i32
    %c0_i32_0 = arith.constant 0 : i32
    %c0_i32_1 = arith.constant 0 : i32
    return %c0_i32, %c0_i32_0 : i32, i32
  }
  func.func @transform_4(%arg0: i32) -> (i32, i32) {
    %c0_i32 = arith.constant 0 : i32
    %c0_i32_0 = arith.constant 0 : i32
    %c0_i32_1 = arith.constant 0 : i32
    return %c0_i32, %c0_i32_0 : i32, i32
  }
  func.func @transform_5(%arg0: i32) -> (i32, i32) {
    %c0_i32 = arith.constant 0 : i32
    %c0_i32_0 = arith.constant 0 : i32
    return %arg0, %c0_i32 : i32, i32
  }
}

</mosaic_0001>

<bundles_post_ra>
// kernel: decoder_forward.1
= control target key start
LH: loop header
LB: loop body
LE: loop exit
PB: predicated region body
PF: predicated region fallthrough
CT: control target
= control target key end

     0   :  { %10 = vsyncpa [#allocation3], 0  ;;  %s248_s0 = inlined_call_operand.vmem [shape: f32[16,8], index: 0, kind: input, shape index: {}]   ;;  %s249_s1 = inlined_call_operand.vmem [shape: f32[8,32], index: 1, kind: input, shape index: {}]   ;;  %s250_s2 = inlined_call_operand.vmem [shape: f32[1,32], index: 2, kind: input, shape index: {}]   ;;  %s251_s3 = inlined_call_operand.hbm [shape: f32[32,128], index: 3, kind: input, shape index: {}]   ;;  %s252_s4 = inlined_call_operand.vmem [shape: f32[1,128], index: 4, kind: input, shape index: {}]   ;;  %s253_s5 = inlined_call_operand.hbm [shape: f32[16,128], index: 5, kind: output, shape index: {}]  }
   0x1   :  { %11 = vsyncpa [#allocation4], 0  ;;  %s22_s20 = sshll.u32 %s251_s3, 4  ;;  %s187_s21 = smov [#allocation2]   ;;  %s23_s20 = int_to_ptr.hbm [resolvable:$true] %s22_s20 }
   0x2   :  { %s24_s22 = sshll.u32 %s187_s21, 4  ;;  %s188_s23 = smov 128   ;;  %s25_s22 = int_to_ptr.vmem [resolvable:$true] %s24_s22 }
   0x3   :  { %s189_s24 = smov 8  }
   0x4   :  { %30 = dma.hbm_to_vmem [thread:$0]  %s23_s20, 512, %s25_s22, [#allocation3], %s188_s23, %s188_s23, %s189_s24  }
   0x5   :  { %183 = dma.done.wait [#allocation3], 512  }
   0x6   :  { %184 = vsyncadd [#allocation3], 4294966784  ;;  %v41_v0 = vld [vmem:[%s249_s1] sm:$0xff]  ;;  %vm51_vm0 = vcmask 1043456   ;;  %v39_v2 = vld [vmem:[%s248_s0 + $0x8] sm:$0xff]  ;;  %vm47_vm1 = vcmask 64512  }
   0x7   :  { %v38_v1 = vld [vmem:[%s248_s0] sm:$0xff]  ;;  %v42_v3 = vpack.c.bf16 %v41_v0, %v41_v0  ;;  %v73_v6 = vld [vmem:[#allocation2 + $0x10] sm:$0xff]  ;;  %v74_v7 = vld [vmem:[#allocation2 + $0x18] sm:$0xff]  ;;  %vm82_vm2 = vcmask 261120   ;;  %s110_s10 = sshll.u32 %s253_s5, 4  ;;  %s111_s10 = int_to_ptr.hbm [resolvable:$true] %s110_s10 }
   0x8   :  { %v40_v5 = vpack.c.bf16 %v39_v2, %v38_v1  ;;  %v76_v8 = vpack.c.bf16 %v74_v7, %v73_v6  ;;  %v71_v9 = vld [vmem:[#allocation2] sm:$0xff]  ;;  %v72_v10 = vld [vmem:[#allocation2 + $0x8] sm:$0xff] }
   0x9   :  { %v53_v4 = vsel %vm51_vm0, %v42_v3, 0  ;;  %v75_v11 = vpack.c.bf16 %v72_v10, %v71_v9  ;;  %v129_v13 = vld [vmem:[%s250_s2] ss:$0 sm:$0xff]  ;;  %s190_s2 = smov [#allocation5]  }
   0xa   :  { %62 = vmatpush.bf16.msra.mxu0 %v53_v4  ;;  %92 = vmatpush.bf16.msra.mxu1 %v76_v8  ;;  %v130_v20 = vld [vmem:[%s252_s4] ss:$0 sm:$0xff]  ;;  %s108_s7 = sshll.u32 %s190_s2, 4  ;;  %s109_s7 = int_to_ptr.vmem [resolvable:$true] %s108_s7 }
   0xd   :  { %123 = vmatmul.msk.bf16.vlgmr.msra.gmra.mxu0 %vm47_vm1, %v40_v5 }
   0xe   :  { %93 = vmatpush.bf16.msra.mxu1 %v75_v11 }
  0x8a   :  { %v64_v12 = vpop.f32.mrf.mxu0 }
  0x8b   :  { %v65_v14 = vadd.f32 %v129_v13, %v64_v12 }
  0x8d   :  { %v69_v17 = vmax.f32 %v65_v14, 0.0 }
  0x92   :  { %v66_v15 = vpop.f32.mrf.mxu0 }
  0x93   :  { %v67_v16 = vadd.f32 %v129_v13, %v66_v15 }
  0x95   :  { %v70_v18 = vmax.f32 %v67_v16, 0.0 }
  0x97   :  { %v77_v19 = vpack.c.bf16 %v70_v18, %v69_v17 }
  0x99   :  { %124 = vmatmul.msk.bf16.vlgmr.msra.gmra.mxu1 %vm82_vm2, %v77_v19 }
 0x116   :  { %v95_v21 = vpop.f32.mrf.mxu1 }
 0x117   :  { %v96_v22 = vadd.f32 %v130_v20, %v95_v21 }
 0x119   :  { %131 = vtanh.f32 %v96_v22 }
 0x11e   :  { %v97_v23 = vpop.f32.mrf.mxu1 }
 0x11f   :  { %v132_v24 = vpop.eup %131  ;;  %v98_v25 = vadd.f32 %v130_v20, %v97_v23 }
 0x120   :  { %102 = vst [vmem:[#allocation5] sm:$0xff] %v132_v24 }
 0x121   :  { %133 = vtanh.f32 %v98_v25 }
 0x127   :  { %v134_v26 = vpop.eup %133 }
 0x128   :  { %103 = vst [vmem:[#allocation5 + $0x8] sm:$0xff] %v134_v26 }
 0x129   :  { %116 = dma.vmem_to_hbm [thread:$0]  %s109_s7, 256, %s111_s10, [#allocation4], %s188_s23, %s188_s23, %s189_s24  }
 0x12a   :  { %185 = dma.done.wait [#allocation4], 256  }
 0x12b   :  { %186 = vsyncadd [#allocation4], 4294967040 }
 0x12c   :  { %121 = vsyncpa [#allocation3], 1 }
 0x12d   :  { %122 = vsyncpa [#allocation4], 1 }

</bundles_post_ra>
